<compile_context>
chip_gen: v5e
topology: v5e:2x2
jax: 0.10.0
libtpu: 0.0.40
codegen_flags: <defaults>
</compile_context>

<pallas_src>
import jax
import jax.numpy as jnp
from jax.experimental import pallas as pl
from jax.experimental.pallas import tpu as pltpu


def _make_divisible(ch, divisor=8, min_ch=None):
    if min_ch is None:
        min_ch = divisor
    new_ch = max(min_ch, int(ch + divisor / 2) // divisor * divisor)
    if new_ch < 0.9 * ch:
        new_ch += divisor
    return new_ch


def _se_kernel(x_ref, w1_ref, b1_ref, w2_ref, b2_ref, o_ref):
    # x_ref / o_ref: (Nb, C, HWp). Spatial padding is zeros, so sum-pool is exact.
    # Global sum pool; the 1/HW mean factor is pre-folded into w1 by the wrapper.
    pooled = jnp.sum(x_ref[...].astype(jnp.float32), axis=-1)        # (Nb, C)

    # fc1 (1x1 conv == dense) + ReLU
    s1 = jnp.dot(pooled, w1_ref[...], preferred_element_type=jnp.float32)
    s1 = jnp.maximum(s1 + b1_ref[...], 0.0)                          # (Nb, Csq)

    # fc2 + hardsigmoid: clip(x/6 + 1/2, 0, 1)
    s2 = jnp.dot(s1, w2_ref[...], preferred_element_type=jnp.float32)
    s2 = jnp.clip((s2 + b2_ref[...]) * (1.0 / 6.0) + 0.5, 0.0, 1.0)  # (Nb, C)

    # Broadcast-multiply the per-channel gate over the lane (spatial) axis.
    # Re-read x_ref here to keep its live range short for large blocks.
    o_ref[...] = x_ref[...] * s2[:, :, None].astype(o_ref.dtype)


def _pick_batch_block(N, C, HWp, itemsize, budget_bytes=16 << 20):
    """Largest divisor of N whose (in+out, double-buffered) block fits the budget."""
    nb = 1
    for cand in range(1, N + 1):
        if N % cand:
            continue
        if 4 * cand * C * HWp * itemsize <= budget_bytes:
            nb = cand
    return nb


def squeeze_excitation(x, w1, b1, w2, b2):
    """SE block. x: (N, C, H, W); w1: (C, Csq); b1: (Csq,)/(1,Csq); w2: (Csq, C); b2: (C,)/(1,C)."""
    N, C, H, W = x.shape
    HW = H * W
    Csq = w1.shape[1]

    # Lane-dense spatial axis: pad HW up to a multiple of 128 with zeros.
    HWp = ((HW + 127) // 128) * 128
    x_flat = x.reshape(N, C, HW)
    if HWp != HW:
        x_flat = jnp.pad(x_flat, ((0, 0), (0, 0), (0, HWp - HW)))

    # Fold 1/HW (mean) into w1; keep gate params in f32.
    w1_s = (jnp.asarray(w1, jnp.float32) * (1.0 / HW))
    b1_r = jnp.asarray(b1, jnp.float32).reshape(1, Csq)
    w2_f = jnp.asarray(w2, jnp.float32)
    b2_r = jnp.asarray(b2, jnp.float32).reshape(1, C)

    itemsize = jnp.dtype(x.dtype).itemsize
    Nb = _pick_batch_block(N, C, HWp, itemsize)
    block_bytes = Nb * C * HWp * itemsize
    # Budget against v7x (64 MiB physical / 32 MiB default scoped); never exceed that.
    vmem_limit = int(min(max(32 << 20, 6 * block_bytes), 48 << 20))

    bytes_accessed = 2 * N * C * HWp * itemsize + 4 * (w1_s.size + b1_r.size + w2_f.size + b2_r.size)
    flops = 4 * N * C * Csq + 3 * N * C * HWp  # advisory: tiny gate matmuls + pool + scale

    out_flat = pl.pallas_call(
        _se_kernel,
        out_shape=jax.ShapeDtypeStruct((N, C, HWp), x.dtype),
        grid_spec=pltpu.PrefetchScalarGridSpec(
            num_scalar_prefetch=0,
            grid=(N // Nb,),
            in_specs=[
                pl.BlockSpec((Nb, C, HWp), lambda n: (n, 0, 0)),
                pl.BlockSpec((C, Csq), lambda n: (0, 0)),
                pl.BlockSpec((1, Csq), lambda n: (0, 0)),
                pl.BlockSpec((Csq, C), lambda n: (0, 0)),
                pl.BlockSpec((1, C), lambda n: (0, 0)),
            ],
            out_specs=pl.BlockSpec((Nb, C, HWp), lambda n: (n, 0, 0)),
        ),
        compiler_params=pltpu.CompilerParams(
            dimension_semantics=("parallel",),
            vmem_limit_bytes=vmem_limit,
        ),
        cost_estimate=pl.CostEstimate(
            flops=flops, transcendentals=0, bytes_accessed=bytes_accessed),
    )(x_flat, w1_s, b1_r, w2_f, b2_r)

    if HWp != HW:
        out_flat = out_flat[:, :, :HW]
    return out_flat.reshape(N, C, H, W)


def reference_se(x, w1, b1, w2, b2):
    pooled = jnp.mean(x, axis=(2, 3))                       # (N, C)
    s1 = jnp.maximum(pooled @ w1 + b1, 0.0)                 # (N, Csq)
    s2 = jnp.clip((s1 @ w2 + b2) / 6.0 + 0.5, 0.0, 1.0)     # (N, C)
    return x * s2[:, :, None, None]


if __name__ == "__main__":
    key = jax.random.PRNGKey(0)

    N, C = 2, 16
    squeeze_factor = 4
    Csq = _make_divisible(C // squeeze_factor, 8)           # -> 8

    k_x1, k_x2, k_w1, k_b1, k_w2, k_b2 = jax.random.split(key, 6)

    # Deterministic synthetic parameters (fc1: C->Csq, fc2: Csq->C, 1x1 convs).
    w1 = jax.random.normal(k_w1, (C, Csq), dtype=jnp.float32) * 0.1
    b1 = jax.random.normal(k_b1, (1, Csq), dtype=jnp.float32) * 0.1
    w2 = jax.random.normal(k_w2, (Csq, C), dtype=jnp.float32) * 0.1
    b2 = jax.random.normal(k_b2, (1, C), dtype=jnp.float32) * 0.1

    # Case 1: HW already a multiple of 128 (16x16 = 256 lanes, no padding).
    x1 = jax.random.normal(k_x1, (N, C, 16, 16), dtype=jnp.float32)
    out1 = jax.block_until_ready(squeeze_excitation(x1, w1, b1, w2, b2))
    ref1 = reference_se(x1, w1, b1[0], w2, b2[0])
    assert out1.shape == x1.shape
    assert jnp.allclose(out1, ref1, atol=1e-5, rtol=1e-5), "mismatch vs reference (16x16)"

    # Case 2: real MobileNetV3-style spatial size (14x14 = 196 -> padded to 256).
    x2 = jax.random.normal(k_x2, (N, C, 14, 14), dtype=jnp.float32)
    out2 = jax.block_until_ready(squeeze_excitation(x2, w1, b1, w2, b2))
    ref2 = reference_se(x2, w1, b1[0], w2, b2[0])
    assert out2.shape == x2.shape
    assert jnp.allclose(out2, ref2, atol=1e-5, rtol=1e-5), "mismatch vs reference (14x14)"

    print("KERNEL_OK")
</pallas_src>

<mosaic_0001>
module attributes {stable_mosaic.version = 11 : i64} {
  func.func @_se_kernel(%arg0: i32, %arg1: memref<2x16x256xf32, #tpu.memory_space<vmem>>, %arg2: memref<16x8xf32, #tpu.memory_space<vmem>>, %arg3: memref<1x8xf32, #tpu.memory_space<vmem>>, %arg4: memref<8x16xf32, #tpu.memory_space<vmem>>, %arg5: memref<1x16xf32, #tpu.memory_space<vmem>>, %arg6: memref<2x16x256xf32, #tpu.memory_space<vmem>>) attributes {dimension_semantics = [#tpu.dimension_semantics<parallel>], iteration_bounds = array<i64: 1>, scalar_prefetch = 0 : i64, scratch_operands = 0 : i64, tpu.core_type = #tpu.core_type<tc>, window_params = [{transform_indices = @transform_0, window_bounds = array<i64: 2, 16, 256>}, {pipeline_mode = #tpu.pipeline_mode<synchronous>, transform_indices = @transform_1, window_bounds = array<i64: 16, 8>}, {pipeline_mode = #tpu.pipeline_mode<synchronous>, transform_indices = @transform_2, window_bounds = array<i64: 1, 8>}, {pipeline_mode = #tpu.pipeline_mode<synchronous>, transform_indices = @transform_3, window_bounds = array<i64: 8, 16>}, {pipeline_mode = #tpu.pipeline_mode<synchronous>, transform_indices = @transform_4, window_bounds = array<i64: 1, 16>}, {transform_indices = @transform_5, window_bounds = array<i64: 2, 16, 256>}]} {
    %c0 = arith.constant 0 : index
    %c0_0 = arith.constant 0 : index
    %c0_1 = arith.constant 0 : index
    %0 = vector.load %arg1[%c0, %c0_0, %c0_1] : memref<2x16x256xf32, #tpu.memory_space<vmem>>, vector<2x16x256xf32>
    %cst = arith.constant dense<0.000000e+00> : vector<2x16xf32>
    %1 = vector.multi_reduction <add>, %0, %cst [2] : vector<2x16x256xf32> to vector<2x16xf32>
    %c0_2 = arith.constant 0 : index
    %c0_3 = arith.constant 0 : index
    %2 = vector.load %arg2[%c0_2, %c0_3] : memref<16x8xf32, #tpu.memory_space<vmem>>, vector<16x8xf32>
    %cst_4 = arith.constant dense<0.000000e+00> : vector<2x8xf32>
    %3 = tpu.matmul %1, %2, %cst_4 {dimension_numbers = #tpu.dot_dimension_numbers<[1], [0], [0], [1], [0, 0, 1, 1], [], []>} : vector<2x16xf32>, vector<16x8xf32>, vector<2x8xf32> -> vector<2x8xf32>
    %c0_5 = arith.constant 0 : index
    %c0_6 = arith.constant 0 : index
    %4 = vector.load %arg3[%c0_5, %c0_6] : memref<1x8xf32, #tpu.memory_space<vmem>>, vector<1x8xf32>
    %5 = vector.broadcast %4 : vector<1x8xf32> to vector<2x8xf32>
    %6 = arith.addf %3, %5 : vector<2x8xf32>
    %cst_7 = arith.constant 0.000000e+00 : f32
    %7 = vector.broadcast %cst_7 : f32 to vector<2x8xf32>
    %8 = arith.maximumf %6, %7 : vector<2x8xf32>
    %c0_8 = arith.constant 0 : index
    %c0_9 = arith.constant 0 : index
    %9 = vector.load %arg4[%c0_8, %c0_9] : memref<8x16xf32, #tpu.memory_space<vmem>>, vector<8x16xf32>
    %cst_10 = arith.constant dense<0.000000e+00> : vector<2x16xf32>
    %10 = tpu.matmul %8, %9, %cst_10 {dimension_numbers = #tpu.dot_dimension_numbers<[1], [0], [0], [1], [0, 0, 1, 1], [], []>} : vector<2x8xf32>, vector<8x16xf32>, vector<2x16xf32> -> vector<2x16xf32>
    %c0_11 = arith.constant 0 : index
    %c0_12 = arith.constant 0 : index
    %11 = vector.load %arg5[%c0_11, %c0_12] : memref<1x16xf32, #tpu.memory_space<vmem>>, vector<1x16xf32>
    %12 = vector.broadcast %11 : vector<1x16xf32> to vector<2x16xf32>
    %13 = arith.addf %10, %12 : vector<2x16xf32>
    %cst_13 = arith.constant 0.166666672 : f32
    %14 = vector.broadcast %cst_13 : f32 to vector<2x16xf32>
    %15 = arith.mulf %13, %14 : vector<2x16xf32>
    %cst_14 = arith.constant 5.000000e-01 : f32
    %16 = vector.broadcast %cst_14 : f32 to vector<2x16xf32>
    %17 = arith.addf %15, %16 : vector<2x16xf32>
    %cst_15 = arith.constant 0.000000e+00 : f32
    %cst_16 = arith.constant 1.000000e+00 : f32
    %18 = vector.broadcast %cst_15 : f32 to vector<2x16xf32>
    %19 = arith.maximumf %18, %17 : vector<2x16xf32>
    %20 = vector.broadcast %cst_16 : f32 to vector<2x16xf32>
    %21 = arith.minimumf %20, %19 : vector<2x16xf32>
    %c0_17 = arith.constant 0 : index
    %c0_18 = arith.constant 0 : index
    %c0_19 = arith.constant 0 : index
    %22 = vector.load %arg1[%c0_17, %c0_18, %c0_19] : memref<2x16x256xf32, #tpu.memory_space<vmem>>, vector<2x16x256xf32>
    %23 = vector.shape_cast %21 : vector<2x16xf32> to vector<2x16x1xf32>
    %24 = vector.broadcast %23 : vector<2x16x1xf32> to vector<2x16x256xf32>
    %25 = arith.mulf %22, %24 : vector<2x16x256xf32>
    %c0_20 = arith.constant 0 : index
    %c0_21 = arith.constant 0 : index
    %c0_22 = arith.constant 0 : index
    %26 = vector.load %arg6[%c0_20, %c0_21, %c0_22] : memref<2x16x256xf32, #tpu.memory_space<vmem>>, vector<2x16x256xf32>
    tpu.vector_store %arg6[%c0_20, %c0_21, %c0_22], %25 {strides = array<i32>} : memref<2x16x256xf32, #tpu.memory_space<vmem>>, vector<2x16x256xf32>,
    return
  }
  func.func @transform_0(%arg0: i32) -> (i32, i32, i32) {
    %c0_i32 = arith.constant 0 : i32
    %c0_i32_0 = arith.constant 0 : i32
    %c0_i32_1 = arith.constant 0 : i32
    return %arg0, %c0_i32, %c0_i32_0 : i32, i32, i32
  }
  func.func @transform_1(%arg0: i32) -> (i32, i32) {
    %c0_i32 = arith.constant 0 : i32
    %c0_i32_0 = arith.constant 0 : i32
    %c0_i32_1 = arith.constant 0 : i32
    return %c0_i32, %c0_i32_0 : i32, i32
  }
  func.func @transform_2(%arg0: i32) -> (i32, i32) {
    %c0_i32 = arith.constant 0 : i32
    %c0_i32_0 = arith.constant 0 : i32
    %c0_i32_1 = arith.constant 0 : i32
    return %c0_i32, %c0_i32_0 : i32, i32
  }
  func.func @transform_3(%arg0: i32) -> (i32, i32) {
    %c0_i32 = arith.constant 0 : i32
    %c0_i32_0 = arith.constant 0 : i32
    %c0_i32_1 = arith.constant 0 : i32
    return %c0_i32, %c0_i32_0 : i32, i32
  }
  func.func @transform_4(%arg0: i32) -> (i32, i32) {
    %c0_i32 = arith.constant 0 : i32
    %c0_i32_0 = arith.constant 0 : i32
    %c0_i32_1 = arith.constant 0 : i32
    return %c0_i32, %c0_i32_0 : i32, i32
  }
  func.func @transform_5(%arg0: i32) -> (i32, i32, i32) {
    %c0_i32 = arith.constant 0 : i32
    %c0_i32_0 = arith.constant 0 : i32
    %c0_i32_1 = arith.constant 0 : i32
    return %arg0, %c0_i32, %c0_i32_0 : i32, i32, i32
  }
}

</mosaic_0001>

<bundles_post_ra>
// kernel: tpu_custom_call.1
= control target key start
LH: loop header
LB: loop body
LE: loop exit
PB: predicated region body
PF: predicated region fallthrough
CT: control target
= control target key end

     0   :  { %10 = vsyncpa [#allocation3], 0  ;;  %s347_s0 = inlined_call_operand.hbm [shape: f32[2,16,256], index: 0, kind: input, shape index: {}]   ;;  %s348_s1 = inlined_call_operand.vmem [shape: f32[16,8], index: 1, kind: input, shape index: {}]   ;;  %s349_s2 = inlined_call_operand.vmem [shape: f32[1,8], index: 2, kind: input, shape index: {}]   ;;  %s350_s3 = inlined_call_operand.vmem [shape: f32[8,16], index: 3, kind: input, shape index: {}]   ;;  %s351_s4 = inlined_call_operand.vmem [shape: f32[1,16], index: 4, kind: input, shape index: {}]   ;;  %s352_s5 = inlined_call_operand.hbm [shape: f32[2,16,256], index: 5, kind: output, shape index: {}]  }
   0x1   :  { %11 = vsyncpa [#allocation4], 0  ;;  %s16_s20 = sshll.u32 %s347_s0, 4  ;;  %s262_s21 = smov [#allocation2]   ;;  %s17_s20 = int_to_ptr.hbm [resolvable:$true] %s16_s20 }
   0x2   :  { %s18_s22 = sshll.u32 %s262_s21, 4  ;;  %s263_s23 = smov 256   ;;  %s19_s22 = int_to_ptr.vmem [resolvable:$true] %s18_s22 }
   0x3   :  { %s264_s24 = smov 16  }
   0x4   :  { %24 = dma.hbm_to_vmem [thread:$0]  %s17_s20, 1024, %s19_s22, [#allocation3], %s263_s23, %s263_s23, %s264_s24  }
   0x5   :  { %258 = dma.done.wait [#allocation3], 1024  }
   0x6   :  { %259 = vsyncadd [#allocation3], 4294966272  ;;  %v302_v0 = vld [vmem:[#allocation2 + $0x20] sm:$0xff]  ;;  %v304_v1 = vld [vmem:[#allocation2 + $0x28] sm:$0xff]  ;;  %v67_v14 = vlaneseq  ;;  %vm72_vm0 = vcmask 130112   ;;  %vm77_vm1 = vcmask 1041409  }
   0x7   :  { %v306_v2 = vld [vmem:[#allocation2] sm:$0xff]  ;;  %v51_v3 = vadd.f32 %v304_v1, %v302_v0  ;;  %v310_v4 = vld [vmem:[#allocation2 + $0x8] sm:$0xff]  ;;  %v314_v6 = vld [vmem:[#allocation2 + $0x30] sm:$0xff]  ;;  %vm79_vm2 = vcmask 130048   ;;  %vm108_vm3 = vcmask 64512   ;;  %s184_s9 = sshll.u32 %s352_s5, 4  ;;  %s185_s9 = int_to_ptr.hbm [resolvable:$true] %s184_s9 }
   0x8   :  { %v45_v5 = vadd.f32 %v310_v4, %v306_v2  ;;  %v316_v7 = vld [vmem:[#allocation2 + $0x38] sm:$0xff]  ;;  %v39_v8 = vld [vmem:[#allocation2 + $0x10] sm:$0xff]  ;;  %v58_v12 = vld [vmem:[%s348_s1 + $0x8] sm:$0xff]  ;;  %v68_v17 = vand.u32 127, %v67_v14  ;;  %v138_v33 = vshrl.u32 %v67_v14, 7 }
   0x9   :  { %52 = vadd.xlane.f32.xlu1 %v51_v3  ;;  %v40_v9 = vld [vmem:[#allocation2 + $0x18] sm:$0xff]  ;;  %v54_v10 = vadd.f32 %v316_v7, %v314_v6  ;;  %v57_v13 = vld [vmem:[%s348_s1] sm:$0xff]  ;;  %96 = vmatpush.msra.mxu0 %v58_v12 }
   0xa   :  { %46 = vadd.xlane.f32.xlu0 %v45_v5  ;;  %v48_v11 = vadd.f32 %v40_v9, %v39_v8  ;;  %v70_v18 = vadd.s32 4294967288, %v68_v17  ;;  %v103_v28 = vld [vmem:[%s350_s3] sm:$0xff]  ;;  %203 = vset.pattern.permute.xlu2 %v138_v33  ;;  %v145_v34 = vadd.s32 8, %v138_v33 }
   0xb   :  { %97 = vmatpush.msra.mxu0 %v57_v13  ;;  %127 = vmatpush.msra.mxu1 %v103_v28  ;;  %v208_v29 = vld [vmem:[%s349_s2] ss:$0 sm:$0xff]  ;;  %s265_s2 = smov [#allocation5]  }
   0xc   :  { %205 = vset.pattern.permute.xlu0 %v138_v33  ;;  %206 = vset.pattern.permute.xlu1 %v145_v34  ;;  %v209_v35 = vld [vmem:[%s351_s4] ss:$0 sm:$0xff]  ;;  %s182_s3 = sshll.u32 %s265_s2, 4  ;;  %s183_s3 = int_to_ptr.vmem [resolvable:$true] %s182_s3 }
  0x11   :  { %55 = vadd.xlane.f32.xlu1 %v54_v10 }
  0x12   :  { %49 = vadd.xlane.f32.xlu0 %v48_v11 }
  0x7c   :  { %v53_v15 = vpop.xlane.xlu1 %52 }
  0x7d   :  { %v47_v16 = vpop.xlane.xlu0 %46  ;;  %v74_v20 = vperm.slane %v53_v15, %v68_v17 }
  0x7e   :  { %v69_v23 = vperm.slane %v47_v16, %v68_v17 }
  0x84   :  { %v56_v19 = vpop.xlane.xlu1 %55 }
  0x85   :  { %v75_v21 = vperm.slane %v56_v19, %v70_v18  ;;  %v50_v22 = vpop.xlane.xlu0 %49 }
  0x86   :  { %v71_v24 = vperm.slane %v50_v22, %v70_v18 }
  0x87   :  { %v76_v25 = vsel %vm72_vm0, %v75_v21, %v74_v20 }
  0x88   :  { %v73_v26 = vsel %vm72_vm0, %v71_v24, %v69_v23 }
  0x89   :  { %v78_v27 = vsel %vm77_vm1, %v76_v25, %v73_v26 }
  0x8a   :  { %197 = vmatmul.msk.f32.vlgmr.msra.gmra.mxu0 %vm79_vm2, %v78_v27 }
 0x107   :  { %v99_v30 = vpop.f32.mrf.mxu0 }
 0x108   :  { %v100_v31 = vadd.f32 %v208_v29, %v99_v30 }
 0x10a   :  { %v102_v32 = vmax.f32 %v100_v31, 0.0 }
 0x10c   :  { %198 = vmatmul.msk.f32.vlgmr.msra.gmra.mxu1 %vm108_vm3, %v102_v32 }
 0x189   :  { %v129_v36 = vpop.f32.mrf.mxu1 }
 0x18a   :  { %v130_v37 = vadd.f32 %v209_v35, %v129_v36 }
 0x18c   :  { %v132_v38 = vmul.f32 0.16666667, %v130_v37 }
 0x18e   :  { %v133_v39 = vadd.f32 0.5, %v132_v38 }
 0x190   :  { %v134_v40 = vmax.f32 %v133_v39, 0.0 }
 0x192   :  { %v135_v41 = vmin.f32 %v134_v40, 1.0 }
 0x194   :  { %v149_v42 = vperm.slane %v135_v41, 1  ;;  %v136_v43 = vperm.slane %v135_v41, 0 }
 0x196   :  { %160 = vperm.xlu1 %206, %v149_v42   ;;  %154 = vperm.xlu0 %205, %v149_v42  }
 0x197   :  { %141 = vperm.xlu2 %203, %v136_v43  }
 0x19e   :  { %207 = vset.pattern.permute.xlu0 %v145_v34 }
 0x19f   :  { %204 = vset.pattern.permute.xlu2 %v145_v34 }
 0x1a7   :  { %147 = vperm.xlu2 %204, %v136_v43  }
 0x1f1   :  { %v142_v44 = vpop.permute.xlu2 %141 }
 0x1f2   :  { %v162_v45 = vmul.f32 %v142_v44, %v306_v2  ;;  %v163_v46 = vmul.f32 %v142_v44, %v310_v4 }
 0x1f4   :  { %170 = vst [vmem:[#allocation5] sm:$0xff] %v162_v45 }
 0x1f5   :  { %171 = vst [vmem:[#allocation5 + $0x8] sm:$0xff] %v163_v46 }
 0x201   :  { %v148_v47 = vpop.permute.xlu2 %147 }
 0x202   :  { %v164_v48 = vmul.f32 %v148_v47, %v39_v8  ;;  %v165_v49 = vmul.f32 %v148_v47, %v40_v9 }
 0x204   :  { %172 = vst [vmem:[#allocation5 + $0x10] sm:$0xff] %v164_v48 }
 0x205   :  { %173 = vst [vmem:[#allocation5 + $0x18] sm:$0xff] %v165_v49 }
 0x208   :  { %v161_v50 = vpop.permute.xlu1 %160  ;;  %v155_v51 = vpop.permute.xlu0 %154 }
 0x209   :  { %v168_v52 = vmul.f32 %v161_v50, %v314_v6  ;;  %v169_v53 = vmul.f32 %v161_v50, %v316_v7  ;;  %v166_v54 = vmul.f32 %v155_v51, %v302_v0  ;;  %v167_v55 = vmul.f32 %v155_v51, %v304_v1 }
 0x20b   :  { %176 = vst [vmem:[#allocation5 + $0x30] sm:$0xff] %v168_v52 }
 0x20c   :  { %177 = vst [vmem:[#allocation5 + $0x38] sm:$0xff] %v169_v53 }
 0x20d   :  { %174 = vst [vmem:[#allocation5 + $0x20] sm:$0xff] %v166_v54 }
 0x20e   :  { %175 = vst [vmem:[#allocation5 + $0x28] sm:$0xff] %v167_v55 }
 0x20f   :  { %190 = dma.vmem_to_hbm [thread:$0]  %s183_s3, 1024, %s185_s9, [#allocation4], %s263_s23, %s263_s23, %s264_s24  }
 0x210   :  { %260 = dma.done.wait [#allocation4], 1024  }
 0x211   :  { %261 = vsyncadd [#allocation4], 4294966272 }
 0x212   :  { %195 = vsyncpa [#allocation3], 1 }
 0x213   :  { %196 = vsyncpa [#allocation4], 1 }

</bundles_post_ra>
